<compile_context>
chip_gen: v5e
topology: v5e:2x2
jax: 0.10.0
libtpu: 0.0.40
codegen_flags: <defaults>
</compile_context>

<pallas_src>
import jax
import jax.numpy as jnp
from jax.experimental import pallas as pl
from jax.experimental.pallas import tpu as pltpu


def patch_embed_kernel(x_ref, pos_ref, out_ref):
    # x_ref:   (TB, C, L)
    # pos_ref: (1,  C, L)  -> broadcasts over the batch-tile axis
    out_ref[...] = x_ref[...] + pos_ref[...]


def patch_embed(x, pos_embedding):
    """x: (B, C, L); pos_embedding: (1, C, L) or (C, L).  Returns x + pos."""
    B, C, L = x.shape
    pos = jnp.asarray(pos_embedding, dtype=x.dtype).reshape(1, C, L)

    # Tile over batch only; each block keeps the full (C, L) plane so the
    # (8, 128) block-shape constraint is trivially satisfied (full dims).
    itemsize = jnp.dtype(x.dtype).itemsize
    bytes_per_batch_elem = C * L * itemsize
    vmem_target = 4 * 1024 * 1024  # per-input-buffer target (~4x w/ double buffering)
    tb = max(1, min(B, vmem_target // max(1, bytes_per_batch_elem)))
    if B > 1:
        # keep at least 2 grid steps so a v7x chip's second TensorCore isn't idle
        tb = min(tb, max(1, B // 2))
    while B % tb != 0:  # pick a divisor so every block is full-sized
        tb -= 1
    grid = (B // tb,)

    return pl.pallas_call(
        patch_embed_kernel,
        out_shape=jax.ShapeDtypeStruct((B, C, L), x.dtype),
        grid=grid,
        in_specs=[
            pl.BlockSpec((tb, C, L), lambda b: (b, 0, 0)),   # x tile
            pl.BlockSpec((1, C, L), lambda b: (0, 0, 0)),    # pos (grid-constant)
        ],
        out_specs=pl.BlockSpec((tb, C, L), lambda b: (b, 0, 0)),
        compiler_params=pltpu.CompilerParams(
            dimension_semantics=("parallel",),
        ),
    )(x, pos)


def reference_patch_embed(x, pos_embedding):
    """Pure-JAX reference of the PyTorch forward."""
    return x + jnp.asarray(pos_embedding, dtype=x.dtype).reshape(1, *x.shape[1:])


if __name__ == "__main__":
    B, C, L = 2, 64, 128  # batch, projection_dim, seq_len

    key = jax.random.PRNGKey(0)
    kx, kp = jax.random.split(key)
    x = jax.random.normal(kx, (B, C, L), jnp.float32)
    # equivalent of nn.init.trunc_normal_(std=0.02) for the learned parameter
    pos = 0.02 * jax.random.truncated_normal(kp, -2.0, 2.0, (1, C, L), jnp.float32)

    out = jax.block_until_ready(patch_embed(x, pos))
    ref = jax.block_until_ready(reference_patch_embed(x, pos))

    assert out.shape == (B, C, L), out.shape
    assert jnp.allclose(out, ref, atol=1e-6, rtol=1e-6), float(jnp.max(jnp.abs(out - ref)))
    print("KERNEL_OK")
</pallas_src>

<mosaic_0001>
module attributes {stable_mosaic.version = 11 : i64} {
  func.func @patch_embed_kernel(%arg0: i32, %arg1: memref<1x64x128xf32, #tpu.memory_space<vmem>>, %arg2: memref<1x64x128xf32, #tpu.memory_space<vmem>>, %arg3: memref<1x64x128xf32, #tpu.memory_space<vmem>>) attributes {dimension_semantics = [#tpu.dimension_semantics<parallel>], iteration_bounds = array<i64: 2>, scalar_prefetch = 0 : i64, scratch_operands = 0 : i64, tpu.core_type = #tpu.core_type<tc>, window_params = [{transform_indices = @transform_0, window_bounds = array<i64: 1, 64, 128>}, {pipeline_mode = #tpu.pipeline_mode<synchronous>, transform_indices = @transform_1, window_bounds = array<i64: 1, 64, 128>}, {transform_indices = @transform_2, window_bounds = array<i64: 1, 64, 128>}]} {
    %c0 = arith.constant 0 : index
    %c0_0 = arith.constant 0 : index
    %c0_1 = arith.constant 0 : index
    %0 = vector.load %arg1[%c0, %c0_0, %c0_1] : memref<1x64x128xf32, #tpu.memory_space<vmem>>, vector<1x64x128xf32>
    %c0_2 = arith.constant 0 : index
    %c0_3 = arith.constant 0 : index
    %c0_4 = arith.constant 0 : index
    %1 = vector.load %arg2[%c0_2, %c0_3, %c0_4] : memref<1x64x128xf32, #tpu.memory_space<vmem>>, vector<1x64x128xf32>
    %2 = arith.addf %0, %1 : vector<1x64x128xf32>
    %c0_5 = arith.constant 0 : index
    %c0_6 = arith.constant 0 : index
    %c0_7 = arith.constant 0 : index
    %3 = vector.load %arg3[%c0_5, %c0_6, %c0_7] : memref<1x64x128xf32, #tpu.memory_space<vmem>>, vector<1x64x128xf32>
    tpu.vector_store %arg3[%c0_5, %c0_6, %c0_7], %2 {strides = array<i32>} : memref<1x64x128xf32, #tpu.memory_space<vmem>>, vector<1x64x128xf32>,
    return
  }
  func.func @transform_0(%arg0: i32) -> (i32, i32, i32) {
    %c0_i32 = arith.constant 0 : i32
    %c0_i32_0 = arith.constant 0 : i32
    %c0_i32_1 = arith.constant 0 : i32
    return %arg0, %c0_i32, %c0_i32_0 : i32, i32, i32
  }
  func.func @transform_1(%arg0: i32) -> (i32, i32, i32) {
    %c0_i32 = arith.constant 0 : i32
    %c0_i32_0 = arith.constant 0 : i32
    %c0_i32_1 = arith.constant 0 : i32
    %c0_i32_2 = arith.constant 0 : i32
    return %c0_i32, %c0_i32_0, %c0_i32_1 : i32, i32, i32
  }
  func.func @transform_2(%arg0: i32) -> (i32, i32, i32) {
    %c0_i32 = arith.constant 0 : i32
    %c0_i32_0 = arith.constant 0 : i32
    %c0_i32_1 = arith.constant 0 : i32
    return %arg0, %c0_i32, %c0_i32_0 : i32, i32, i32
  }
}

</mosaic_0001>

<bundles_post_ra>
// kernel: tpu_custom_call.1
= control target key start
LH: loop header
LB: loop body
LE: loop exit
PB: predicated region body
PF: predicated region fallthrough
CT: control target
= control target key end

     0   :  { %7 = vsyncpa [#allocation3], 0  ;;  %s697_s0 = inlined_call_operand.hbm [shape: f32[2,64,128], index: 0, kind: input, shape index: {}]   ;;  %s698_s1 = inlined_call_operand.hbm [shape: f32[1,64,128], index: 1, kind: input, shape index: {}]   ;;  %s699_s2 = inlined_call_operand.hbm [shape: f32[2,64,128], index: 2, kind: output, shape index: {}]  }
   0x1   :  { %9 = vsyncpa [#allocation3 + $0x1], 0 }
   0x2   :  { %10 = vsyncpa [#allocation6], 0 }
   0x3   :  { %11 = vsyncpa [#allocation4], 0 }
   0x4   :  { %13 = vsyncpa [#allocation4 + $0x1], 0  ;;  %s543_s9 = smov 0   ;;  %s545_s10 = smov 0  }
   0x5   :  { %s547_s11 = smov 0   ;;  %s549_s12 = smov 0  }
   0x6 LB: > { %s564_s13 = sadd.s32 4294967295, %s521_s12   ;;  %s312_s14 = sadd.s32 4294967294, %s521_s12   ;;  %s521_s12 = sphi %s549_s12, %s709_s12   ;;  %s517_s11 = sphi %s547_s11, %s708_s11   ;;  %s513_s10 = sphi %s545_s10, %s707_s10   ;;  %s509_s9 = sphi %s543_s9, %s706_s9  }
   0x7   : > { %p39_p0 = scmp.ne.s32.totalorder %s513_s10, %s509_s9  ;;  %p40_p1 = scmp.eq.s32.totalorder %s564_s13, 0 }
   0x8   : > { %p84_p2 = scmp.eq.s32.totalorder %s564_s13, 1  ;;  %p90_p3 = scmp.eq.s32.totalorder %s312_s14, 1 }
   0x9   : > { %p573_p4 = por %p40_p1, %p39_p0  ;;  %p313_p5 = scmp.ge.s32.totalorder %s521_s12, 1 }
   0xa   : > { %p578_p6 = por %p90_p3, %p39_p0  ;;  %p97_p7 = scmp.lt.s32.totalorder %s521_s12, 3 }
   0xb   : > { %s108_s19 = sshll.u32 %s698_s1, 4  ;;  %s523_s21 = smov [#allocation5]   ;;  %s109_s19 = int_to_ptr.hbm [resolvable:$true] %s108_s19 }
   0xc   : > { %p586_p8 = pnand %p313_p5, %p97_p7  ;;  %s110_s22 = sshll.u32 %s523_s21, 4  ;;  %s111_s22 = int_to_ptr.vmem [resolvable:$true] %s110_s22 }
   0xd   : > { %s596_s23 = sadd.s32 1, %s521_s12   ;;  %s524_s24 = smov 128  }
   0xe   : > { %p338_p9 = pneg %p586_p8  ;;  %s525_s25 = smov 8  }
   0xf   : > { %s23_s26 = ssub.s32 %s521_s12, %s596_s23  ;;  %s26_s27 = sadd.s32 1, %s517_s11 }
  0x10   : > { %p339_p10 = pnand %p338_p9, %p40_p1  ;;  %p24_p12 = scmp.eq.s32.totalorder %s23_s26, 0 }
  0x11   : > { %p33_p13 = scmp.ne.s32.totalorder %s517_s11, %s513_s10  ;;  %p34_p0 = scmp.eq.s32.totalorder %s521_s12, 0 }
  0x12   : > { %341 = dma.hbm_to_vmem [thread:$0]  (!%p339_p10), %s109_s19, 1024, %s111_s22, [#allocation6], %s524_s24, %s524_s24, %s525_s25  }
  0x13   : > { %s608_s28 = scalar_select %p24_p12, %s517_s11, %s26_s27  }
  0x14   : > { %p612_p3 = por %p84_p2, %p33_p13  ;;  %p351_p5 = scmp.lt.s32.totalorder %s521_s12, 2 }
  0x15   : > { %s124_s30 = sand.u32 1, %s517_s11   ;;  %s328_s3 = sshll.u32 %s521_s12, 6 }
  0x16   : > { %p35_p7 = por %p34_p0, %p33_p13  ;;  %s316_s4 = sshll.u32 %s124_s30, 6 }
  0x17   : > { %s133_s7 = scalar_lea.hbm %s697_s0, %s328_s3  ;;  %s128_s14 = scalar_lea.vmem [#allocation2], %s316_s4 }
  0x18   : > { %s134_s8 = sshll.u32 %s133_s7, 4  ;;  %s136_s17 = sshll.u32 %s128_s14, 4  ;;  %s135_s8 = int_to_ptr.hbm [resolvable:$true] %s134_s8  ;;  %s137_s17 = int_to_ptr.vmem [resolvable:$true] %s136_s17 }
  0x19   : > { %p622_p9 = pnand %p351_p5, %p35_p7  ;;  %s125_s19 = scalar_lea.sflag [#allocation3], %s124_s30 }
  0x1a   : > { %s421_s21 = sshra.s32 %s135_s8, 4  ;;  %s428_s3 = scalar_lea.hbm %s697_s0, 128  ;;  %s422_s21 = int_to_ptr.hbm [resolvable:$true] %s421_s21 }
  0x1b   : > { %s423_s22 = scalar_lea.hbm %s422_s21, 64  ;;  %p425_p10 = pneg %p622_p9 }
  0x1c   : > { %p424_p2 = scmp.ne.s32.totalorder %s422_s21, %s423_s22  ;;  %p429_p0 = scmp.lt.s32.totalorder %s422_s21, %s697_s0 }
  0x1d   : > { %p430_p5 = scmp.lt.s32.totalorder %s428_s3, %s423_s22 }
  0x1e   : > { %p426_p12 = pnand %p425_p10, %p424_p2 }
  0x1f   : > { %p431_p7 = por %p430_p5, %p429_p0 }
  0x20   : > { %p427_p13 = pneg %p426_p12 }
  0x22   : > { %p432_p11 = pnand %p431_p7, %p427_p13 }
  0x24   : > { %435 = shalt.err (!%p432_p11)
}
  0x25   : > { %345 = dma.hbm_to_vmem [thread:$0]  (!%p622_p9), %s135_s8, 1024, %s137_s17, %s125_s19, %s524_s24, %s524_s24, %s525_s25  }
  0x26   : > { %148 = sbr.rel (%p586_p8) target bundleno = 62 (0x3e), region = 28  ;;  %s642_s30 = sand.u32 (!%p586_p8), 1, %s513_s10  }
  0x27   : > { %s320_s6 = sshll.u32 (!%p586_p8), %s642_s30, 6  ;;  %s151_s7 = scalar_lea.sflag (!%p586_p8), [#allocation3], %s642_s30 }
  0x28   : > { %s646_s14 = scalar_lea.vmem (!%p586_p8), [#allocation2], %s320_s6 }
  0x2b   : > { %496 = dma.done.wait (%p573_p4), %s151_s7, 1024  }
  0x2c   : > { %498 = vsyncadd (%p573_p4), %s151_s7, 4294966272 }
  0x2d   : > { %500 = dma.done.wait (%p40_p1), [#allocation6], 1024  }
  0x2e   : > { %502 = vsyncadd (%p40_p1), [#allocation6], 4294966272  ;;  %s329_s20 = sshll.u32 %s564_s13, 6  ;;  %v181_v0 = vld [vmem:[%s646_s14] sm:$0xff]  ;;  %v182_v2 = vld [vmem:[%s646_s14 + $0x8] sm:$0xff]  ;;  %s180_s13 = scalar_lea.vmem [#allocation7], %s320_s6 }
  0x2f   : > { %v189_v1 = vld [vmem:[#allocation5] sm:$0xff]  ;;  %v190_v4 = vld [vmem:[#allocation5 + $0x8] sm:$0xff]  ;;  %v183_v5 = vld [vmem:[%s646_s14 + $0x10] sm:$0xff]  ;;  %s225_s25 = scalar_lea.hbm %s699_s2, %s329_s20  ;;  %s226_s8 = sshll.u32 %s180_s13, 4  ;;  %s227_s8 = int_to_ptr.vmem [resolvable:$true] %s226_s8 }
  0x30   : > { %v197_v3 = vadd.f32 %v189_v1, %v181_v0  ;;  %v191_v6 = vld [vmem:[#allocation5 + $0x10] sm:$0xff]  ;;  %v198_v7 = vadd.f32 %v190_v4, %v182_v2  ;;  %v184_v9 = vld [vmem:[%s646_s14 + $0x18] sm:$0xff]  ;;  %v185_v11 = vld [vmem:[%s646_s14 + $0x20] sm:$0xff]  ;;  %s228_s17 = sshll.u32 %s225_s25, 4  ;;  %s214_s18 = scalar_lea.sflag [#allocation4], %s642_s30  ;;  %s229_s17 = int_to_ptr.hbm [resolvable:$true] %s228_s17 }
  0x31   : > { %v199_v8 = vadd.f32 %v191_v6, %v183_v5  ;;  %v192_v10 = vld [vmem:[#allocation5 + $0x18] sm:$0xff]  ;;  %v193_v13 = vld [vmem:[#allocation5 + $0x20] sm:$0xff]  ;;  %v186_v14 = vld [vmem:[%s646_s14 + $0x28] sm:$0xff]  ;;  %s465_s19 = sshra.s32 %s229_s17, 4  ;;  %s471_s27 = scalar_lea.hbm %s699_s2, 128  ;;  %s466_s19 = int_to_ptr.hbm [resolvable:$true] %s465_s19 }
  0x32   : > { %205 = vst [vmem:[%s180_s13] sm:$0xff] %v197_v3  ;;  %v200_v12 = vadd.f32 %v192_v10, %v184_v9  ;;  %v194_v15 = vld [vmem:[#allocation5 + $0x28] sm:$0xff]  ;;  %v201_v16 = vadd.f32 %v193_v13, %v185_v11  ;;  %v187_v18 = vld [vmem:[%s646_s14 + $0x30] sm:$0xff]  ;;  %v188_v20 = vld [vmem:[%s646_s14 + $0x38] sm:$0xff]  ;;  %s467_s21 = scalar_lea.hbm %s466_s19, 64  ;;  %p472_p11 = scmp.lt.s32.totalorder %s466_s19, %s699_s2 }
  0x33   : > { %206 = vst [vmem:[%s180_s13 + $0x8] sm:$0xff] %v198_v7  ;;  %v202_v17 = vadd.f32 %v194_v15, %v186_v14  ;;  %v195_v19 = vld [vmem:[#allocation5 + $0x30] sm:$0xff]  ;;  %v196_v22 = vld [vmem:[#allocation5 + $0x38] sm:$0xff]  ;;  %p468_p1 = scmp.ne.s32.totalorder %s466_s19, %s467_s21  ;;  %p473_p9 = scmp.lt.s32.totalorder %s471_s27, %s467_s21 }
  0x34   : > { %207 = vst [vmem:[%s180_s13 + $0x10] sm:$0xff] %v199_v8  ;;  %v203_v21 = vadd.f32 %v195_v19, %v187_v18  ;;  %v204_v23 = vadd.f32 %v196_v22, %v188_v20 }
  0x35   : > { %208 = vst [vmem:[%s180_s13 + $0x18] sm:$0xff] %v200_v12  ;;  %p469_p4 = pnand %p468_p1, %p612_p3  ;;  %p474_p2 = por %p473_p9, %p472_p11 }
  0x36   : > { %209 = vst [vmem:[%s180_s13 + $0x20] sm:$0xff] %v201_v16 }
  0x37   : > { %210 = vst [vmem:[%s180_s13 + $0x28] sm:$0xff] %v202_v17  ;;  %p470_p8 = pneg %p469_p4 }
  0x38   : > { %211 = vst [vmem:[%s180_s13 + $0x30] sm:$0xff] %v203_v21 }
  0x39   : > { %212 = vst [vmem:[%s180_s13 + $0x38] sm:$0xff] %v204_v23  ;;  %p475_p10 = pnand %p474_p2, %p470_p8 }
  0x3b   : > { %478 = shalt.err (!%p475_p10)
}
  0x3c   : > { %s526_s5 = smov 128   ;;  %s527_s30 = smov 8  }
  0x3d   : > { %336 = dma.vmem_to_hbm [thread:$0]  (%p612_p3), %s227_s8, 1024, %s229_s17, %s214_s18, %s526_s5, %s526_s5, %s527_s30  }
  0x3e PF: > { %s243_s6 = sand.u32 1, %s509_s9   ;;  %p705_p12 = scmp.ge.s32.totalorder %s521_s12, 2 }
  0x3f   : > { %s244_s7 = scalar_lea.sflag [#allocation4], %s243_s6 }
  0x40   : > { %p347_p13 = pnand %p705_p12, %p578_p6 }
  0x42   : > { %p348_p0 = pneg %p347_p13 }
  0x44   : > { %504 = dma.done.wait (%p348_p0), %s244_s7, 1024  }
  0x45   : > { %506 = vsyncadd (%p348_p0), %s244_s7, 4294966272  ;;  %p16_p5 = scmp.ge.s32.totalorder %s596_s23, 4   ;;  %s706_s9 = smov %s513_s10 }
  0x46   : > { %s707_s10 = smov %s517_s11  ;;  %s708_s11 = smov %s608_s28 }
  0x47   : > { %s709_s12 = smov %s596_s23  ;;  %18 = sbr.rel (!%p16_p5) target bundleno = 6 (0x6), region = 77 }
  0x4c   :  { %250 = vsyncpa [#allocation3], 1 }
  0x4d   :  { %252 = vsyncpa [#allocation3 + $0x1], 1 }
  0x4e   :  { %253 = vsyncpa [#allocation6], 1 }
  0x4f   :  { %254 = vsyncpa [#allocation4], 1 }
  0x50   :  { %256 = vsyncpa [#allocation4 + $0x1], 1 }

</bundles_post_ra>
